<compile_context>
chip_gen: v5e
topology: v5e:2x2
jax: 0.10.0
libtpu: 0.0.40
codegen_flags: <defaults>
</compile_context>

<pallas_src>
import jax
import jax.numpy as jnp
from jax.experimental import pallas as pl
from jax.experimental.pallas import tpu as pltpu


LANE = 128


def _round_up(a: int, b: int) -> int:
    return (a + b - 1) // b * b


def proto_net_kernel(x_ref, w1_ref, b1_ref, w2_ref, b2_ref, pT_ref, p2_ref, o_ref):
    # ---- encoder MLP (MXU) -------------------------------------------------
    x = x_ref[...]                                                  # [TN, Dp]
    h = jnp.dot(x, w1_ref[...],
                preferred_element_type=jnp.float32) + b1_ref[...]   # [TN, Hp] f32
    h = jnp.maximum(h, 0.0)                                         # ReLU (VPU)
    z = jnp.dot(h.astype(w2_ref.dtype), w2_ref[...],
                preferred_element_type=jnp.float32) + b2_ref[...]   # [TN, Rp] f32

    # ---- -cdist via ||z||^2 + ||p||^2 - 2 z.p (MXU cross term) -------------
    cross = jnp.dot(z.astype(pT_ref.dtype), pT_ref[...],
                    preferred_element_type=jnp.float32)             # [TN, Kp]
    z2 = jnp.sum(z * z, axis=1, keepdims=True)                      # [TN, 1] (XLU)
    d2 = jnp.maximum(z2 + p2_ref[...] - 2.0 * cross, 0.0)           # f32 epilogue
    o_ref[...] = -jnp.sqrt(d2)                                      # sqrt -> EUP


def prototypical_network(x, prototypes, w1, b1, w2, b2, *,
                         tile_n: int = 512, use_bf16: bool = False):
    """x: [N, input_dim], prototypes: [K, rep_dim]  ->  [N, K] (= -cdist)."""
    N, D_in = x.shape
    K, R = prototypes.shape
    H = w1.shape[1]

    # Lane-pad feature dims to multiples of 128; sublane-pad batch to TILE_N.
    D_pad = _round_up(D_in, LANE)
    H_pad = _round_up(H, LANE)
    R_pad = _round_up(R, LANE)
    K_pad = _round_up(K, LANE)

    tile_n = max(8, _round_up(min(tile_n, N), 8))
    N_pad = _round_up(N, tile_n)

    f32 = jnp.float32
    # Zero padding is inert: zero rows/cols contribute nothing to the matmuls
    # or to z2/p2, and padded-class columns of the output are sliced away.
    x_p = jnp.zeros((N_pad, D_pad), f32).at[:N, :D_in].set(x.astype(f32))
    w1_p = jnp.zeros((D_pad, H_pad), f32).at[:D_in, :H].set(w1.astype(f32))
    b1_p = jnp.zeros((1, H_pad), f32).at[0, :H].set(b1.astype(f32))
    w2_p = jnp.zeros((H_pad, R_pad), f32).at[:H, :R].set(w2.astype(f32))
    b2_p = jnp.zeros((1, R_pad), f32).at[0, :R].set(b2.astype(f32))
    pT_p = jnp.zeros((R_pad, K_pad), f32).at[:R, :K].set(prototypes.T.astype(f32))
    # Hoisted, grid-invariant prototype norms.
    p2_p = jnp.sum(pT_p * pT_p, axis=0, keepdims=True)              # [1, K_pad]

    # Optional bf16 matmul inputs (f32 accumulation stays in the kernel).
    mm_dtype = jnp.bfloat16 if use_bf16 else f32
    x_p = x_p.astype(mm_dtype)
    w1_p = w1_p.astype(mm_dtype)
    w2_p = w2_p.astype(mm_dtype)
    pT_p = pT_p.astype(mm_dtype)

    grid = (N_pad // tile_n,)

    in_specs = [
        pl.BlockSpec((tile_n, D_pad), lambda i: (i, 0)),   # x: streamed per tile
        pl.BlockSpec((D_pad, H_pad), lambda i: (0, 0)),    # w1: resident
        pl.BlockSpec((1, H_pad), lambda i: (0, 0)),        # b1: resident
        pl.BlockSpec((H_pad, R_pad), lambda i: (0, 0)),    # w2: resident
        pl.BlockSpec((1, R_pad), lambda i: (0, 0)),        # b2: resident
        pl.BlockSpec((R_pad, K_pad), lambda i: (0, 0)),    # prototypes^T: resident
        pl.BlockSpec((1, K_pad), lambda i: (0, 0)),        # p2: resident
    ]
    out_specs = pl.BlockSpec((tile_n, K_pad), lambda i: (i, 0))

    itemsize = jnp.dtype(mm_dtype).itemsize
    flops = 2 * N_pad * (D_pad * H_pad + H_pad * R_pad + R_pad * K_pad)
    bytes_accessed = (
        itemsize * (N_pad * D_pad + D_pad * H_pad + H_pad * R_pad + R_pad * K_pad)
        + 4 * (H_pad + R_pad + K_pad)          # biases + p2
        + 4 * N_pad * K_pad                    # output
    )
    cost = pl.CostEstimate(flops=flops,
                           transcendentals=N_pad * K_pad,
                           bytes_accessed=bytes_accessed)

    out_pad = pl.pallas_call(
        proto_net_kernel,
        out_shape=jax.ShapeDtypeStruct((N_pad, K_pad), jnp.float32),
        grid_spec=pltpu.PrefetchScalarGridSpec(
            num_scalar_prefetch=0,
            grid=grid,
            in_specs=in_specs,
            out_specs=out_specs,
        ),
        compiler_params=pltpu.CompilerParams(
            dimension_semantics=("parallel",),
        ),
        cost_estimate=cost,
    )(x_p, w1_p, b1_p, w2_p, b2_p, pT_p, p2_p)

    return out_pad[:N, :K]


def _reference(x, prototypes, w1, b1, w2, b2):
    h = jnp.maximum(x @ w1 + b1, 0.0)
    z = h @ w2 + b2
    diff = z[:, None, :] - prototypes[None, :, :]
    return -jnp.sqrt(jnp.sum(diff * diff, axis=-1))


if __name__ == "__main__":
    # Small, deterministic shapes consistent with the module.  N=24 with
    # tile_n=8 exercises a 3-step grid plus the lane-padding path.
    N, INPUT_DIM, HIDDEN, REP, K = 24, 32, 128, 64, 8

    key = jax.random.PRNGKey(0)
    kx, kp, kw1, kb1, kw2, kb2 = jax.random.split(key, 6)

    x = jax.random.normal(kx, (N, INPUT_DIM), dtype=jnp.float32)
    prototypes = jax.random.normal(kp, (K, REP), dtype=jnp.float32)

    # Deterministic parameter init (PyTorch-style uniform +/- 1/sqrt(fan_in)).
    lim1 = 1.0 / jnp.sqrt(jnp.float32(INPUT_DIM))
    lim2 = 1.0 / jnp.sqrt(jnp.float32(HIDDEN))
    w1 = jax.random.uniform(kw1, (INPUT_DIM, HIDDEN), jnp.float32, -lim1, lim1)
    b1 = jax.random.uniform(kb1, (HIDDEN,), jnp.float32, -lim1, lim1)
    w2 = jax.random.uniform(kw2, (HIDDEN, REP), jnp.float32, -lim2, lim2)
    b2 = jax.random.uniform(kb2, (REP,), jnp.float32, -lim2, lim2)

    out = prototypical_network(x, prototypes, w1, b1, w2, b2, tile_n=8)
    jax.block_until_ready(out)

    ref = _reference(x, prototypes, w1, b1, w2, b2)
    assert out.shape == (N, K)
    assert jnp.allclose(out, ref, atol=1e-4, rtol=1e-4), "mismatch vs JAX reference"

    # bf16 matmul-input path (v6e/v7x MXU): looser tolerance by construction.
    out_bf16 = prototypical_network(x, prototypes, w1, b1, w2, b2,
                                    tile_n=8, use_bf16=True)
    jax.block_until_ready(out_bf16)
    assert jnp.allclose(out_bf16, ref, atol=5e-2, rtol=5e-2), "bf16 path mismatch"

    print("KERNEL_OK")
</pallas_src>

<mosaic_0001>
module attributes {stable_mosaic.version = 11 : i64} {
  func.func @proto_net_kernel(%arg0: i32, %arg1: memref<8x128xf32, #tpu.memory_space<vmem>>, %arg2: memref<128x128xf32, #tpu.memory_space<vmem>>, %arg3: memref<1x128xf32, #tpu.memory_space<vmem>>, %arg4: memref<128x128xf32, #tpu.memory_space<vmem>>, %arg5: memref<1x128xf32, #tpu.memory_space<vmem>>, %arg6: memref<128x128xf32, #tpu.memory_space<vmem>>, %arg7: memref<1x128xf32, #tpu.memory_space<vmem>>, %arg8: memref<8x128xf32, #tpu.memory_space<vmem>>) attributes {dimension_semantics = [#tpu.dimension_semantics<parallel>], iteration_bounds = array<i64: 3>, scalar_prefetch = 0 : i64, scratch_operands = 0 : i64, tpu.core_type = #tpu.core_type<tc>, window_params = [{transform_indices = @transform_0, window_bounds = array<i64: 8, 128>}, {pipeline_mode = #tpu.pipeline_mode<synchronous>, transform_indices = @transform_1, window_bounds = array<i64: 128, 128>}, {pipeline_mode = #tpu.pipeline_mode<synchronous>, transform_indices = @transform_2, window_bounds = array<i64: 1, 128>}, {pipeline_mode = #tpu.pipeline_mode<synchronous>, transform_indices = @transform_3, window_bounds = array<i64: 128, 128>}, {pipeline_mode = #tpu.pipeline_mode<synchronous>, transform_indices = @transform_4, window_bounds = array<i64: 1, 128>}, {pipeline_mode = #tpu.pipeline_mode<synchronous>, transform_indices = @transform_5, window_bounds = array<i64: 128, 128>}, {pipeline_mode = #tpu.pipeline_mode<synchronous>, transform_indices = @transform_6, window_bounds = array<i64: 1, 128>}, {transform_indices = @transform_7, window_bounds = array<i64: 8, 128>}]} {
    %c0 = arith.constant 0 : index
    %c0_0 = arith.constant 0 : index
    %0 = vector.load %arg1[%c0, %c0_0] : memref<8x128xf32, #tpu.memory_space<vmem>>, vector<8x128xf32>
    %c0_1 = arith.constant 0 : index
    %c0_2 = arith.constant 0 : index
    %1 = vector.load %arg2[%c0_1, %c0_2] : memref<128x128xf32, #tpu.memory_space<vmem>>, vector<128x128xf32>
    %cst = arith.constant dense<0.000000e+00> : vector<8x128xf32>
    %2 = tpu.matmul %0, %1, %cst {dimension_numbers = #tpu.dot_dimension_numbers<[1], [0], [0], [1], [0, 0, 1, 1], [], []>} : vector<8x128xf32>, vector<128x128xf32>, vector<8x128xf32> -> vector<8x128xf32>
    %c0_3 = arith.constant 0 : index
    %c0_4 = arith.constant 0 : index
    %3 = vector.load %arg3[%c0_3, %c0_4] : memref<1x128xf32, #tpu.memory_space<vmem>>, vector<1x128xf32>
    %4 = vector.broadcast %3 : vector<1x128xf32> to vector<8x128xf32>
    %5 = arith.addf %2, %4 : vector<8x128xf32>
    %cst_5 = arith.constant 0.000000e+00 : f32
    %6 = vector.broadcast %cst_5 : f32 to vector<8x128xf32>
    %7 = arith.maximumf %5, %6 : vector<8x128xf32>
    %c0_6 = arith.constant 0 : index
    %c0_7 = arith.constant 0 : index
    %8 = vector.load %arg4[%c0_6, %c0_7] : memref<128x128xf32, #tpu.memory_space<vmem>>, vector<128x128xf32>
    %cst_8 = arith.constant dense<0.000000e+00> : vector<8x128xf32>
    %9 = tpu.matmul %7, %8, %cst_8 {dimension_numbers = #tpu.dot_dimension_numbers<[1], [0], [0], [1], [0, 0, 1, 1], [], []>} : vector<8x128xf32>, vector<128x128xf32>, vector<8x128xf32> -> vector<8x128xf32>
    %c0_9 = arith.constant 0 : index
    %c0_10 = arith.constant 0 : index
    %10 = vector.load %arg5[%c0_9, %c0_10] : memref<1x128xf32, #tpu.memory_space<vmem>>, vector<1x128xf32>
    %11 = vector.broadcast %10 : vector<1x128xf32> to vector<8x128xf32>
    %12 = arith.addf %9, %11 : vector<8x128xf32>
    %c0_11 = arith.constant 0 : index
    %c0_12 = arith.constant 0 : index
    %13 = vector.load %arg6[%c0_11, %c0_12] : memref<128x128xf32, #tpu.memory_space<vmem>>, vector<128x128xf32>
    %cst_13 = arith.constant dense<0.000000e+00> : vector<8x128xf32>
    %14 = tpu.matmul %12, %13, %cst_13 {dimension_numbers = #tpu.dot_dimension_numbers<[1], [0], [0], [1], [0, 0, 1, 1], [], []>} : vector<8x128xf32>, vector<128x128xf32>, vector<8x128xf32> -> vector<8x128xf32>
    %15 = arith.mulf %12, %12 : vector<8x128xf32>
    %cst_14 = arith.constant dense<0.000000e+00> : vector<8xf32>
    %16 = vector.multi_reduction <add>, %15, %cst_14 [1] : vector<8x128xf32> to vector<8xf32>
    %17 = vector.shape_cast %16 : vector<8xf32> to vector<8x1xf32>
    %c0_15 = arith.constant 0 : index
    %c0_16 = arith.constant 0 : index
    %18 = vector.load %arg7[%c0_15, %c0_16] : memref<1x128xf32, #tpu.memory_space<vmem>>, vector<1x128xf32>
    %19 = vector.broadcast %17 : vector<8x1xf32> to vector<8x128xf32>
    %20 = vector.broadcast %18 : vector<1x128xf32> to vector<8x128xf32>
    %21 = arith.addf %19, %20 : vector<8x128xf32>
    %cst_17 = arith.constant 2.000000e+00 : f32
    %22 = vector.broadcast %cst_17 : f32 to vector<8x128xf32>
    %23 = arith.mulf %22, %14 : vector<8x128xf32>
    %24 = arith.subf %21, %23 : vector<8x128xf32>
    %cst_18 = arith.constant 0.000000e+00 : f32
    %25 = vector.broadcast %cst_18 : f32 to vector<8x128xf32>
    %26 = arith.maximumf %24, %25 : vector<8x128xf32>
    %27 = math.sqrt %26 : vector<8x128xf32>
    %cst_19 = arith.constant 0.000000e+00 : f32
    %28 = vector.broadcast %cst_19 : f32 to vector<8x128xf32>
    %29 = arith.subf %28, %27 : vector<8x128xf32>
    %c0_20 = arith.constant 0 : index
    %c0_21 = arith.constant 0 : index
    %30 = vector.load %arg8[%c0_20, %c0_21] : memref<8x128xf32, #tpu.memory_space<vmem>>, vector<8x128xf32>
    tpu.vector_store %arg8[%c0_20, %c0_21], %29 {strides = array<i32>} : memref<8x128xf32, #tpu.memory_space<vmem>>, vector<8x128xf32>,
    return
  }
  func.func @transform_0(%arg0: i32) -> (i32, i32) {
    %c0_i32 = arith.constant 0 : i32
    %c0_i32_0 = arith.constant 0 : i32
    return %arg0, %c0_i32 : i32, i32
  }
  func.func @transform_1(%arg0: i32) -> (i32, i32) {
    %c0_i32 = arith.constant 0 : i32
    %c0_i32_0 = arith.constant 0 : i32
    %c0_i32_1 = arith.constant 0 : i32
    return %c0_i32, %c0_i32_0 : i32, i32
  }
  func.func @transform_2(%arg0: i32) -> (i32, i32) {
    %c0_i32 = arith.constant 0 : i32
    %c0_i32_0 = arith.constant 0 : i32
    %c0_i32_1 = arith.constant 0 : i32
    return %c0_i32, %c0_i32_0 : i32, i32
  }
  func.func @transform_3(%arg0: i32) -> (i32, i32) {
    %c0_i32 = arith.constant 0 : i32
    %c0_i32_0 = arith.constant 0 : i32
    %c0_i32_1 = arith.constant 0 : i32
    return %c0_i32, %c0_i32_0 : i32, i32
  }
  func.func @transform_4(%arg0: i32) -> (i32, i32) {
    %c0_i32 = arith.constant 0 : i32
    %c0_i32_0 = arith.constant 0 : i32
    %c0_i32_1 = arith.constant 0 : i32
    return %c0_i32, %c0_i32_0 : i32, i32
  }
  func.func @transform_5(%arg0: i32) -> (i32, i32) {
    %c0_i32 = arith.constant 0 : i32
    %c0_i32_0 = arith.constant 0 : i32
    %c0_i32_1 = arith.constant 0 : i32
    return %c0_i32, %c0_i32_0 : i32, i32
  }
  func.func @transform_6(%arg0: i32) -> (i32, i32) {
    %c0_i32 = arith.constant 0 : i32
    %c0_i32_0 = arith.constant 0 : i32
    %c0_i32_1 = arith.constant 0 : i32
    return %c0_i32, %c0_i32_0 : i32, i32
  }
  func.func @transform_7(%arg0: i32) -> (i32, i32) {
    %c0_i32 = arith.constant 0 : i32
    %c0_i32_0 = arith.constant 0 : i32
    return %arg0, %c0_i32 : i32, i32
  }
}

</mosaic_0001>

<bundles_post_ra>
// kernel: tpu_custom_call.1
= control target key start
LH: loop header
LB: loop body
LE: loop exit
PB: predicated region body
PF: predicated region fallthrough
CT: control target
= control target key end

     0   :  { %s1117_s0 = inlined_call_operand.hbm [shape: f32[24,128], index: 0, kind: input, shape index: {}]   ;;  %s1118_s1 = inlined_call_operand.hbm [shape: f32[128,128], index: 1, kind: input, shape index: {}]   ;;  %s1119_s2 = inlined_call_operand.vmem [shape: f32[1,128], index: 2, kind: input, shape index: {}]   ;;  %s1120_s3 = inlined_call_operand.hbm [shape: f32[128,128], index: 3, kind: input, shape index: {}]   ;;  %s1121_s4 = inlined_call_operand.vmem [shape: f32[1,128], index: 4, kind: input, shape index: {}]   ;;  %s1122_s5 = inlined_call_operand.hbm [shape: f32[128,128], index: 5, kind: input, shape index: {}]   ;;  %s1123_s6 = inlined_call_operand.vmem [shape: f32[1,128], index: 6, kind: input, shape index: {}]   ;;  %s1124_s7 = inlined_call_operand.hbm [shape: f32[24,128], index: 7, kind: output, shape index: {}]  }
   0x1   :  { %1125 = sst [smem:[#allocation15_spill]] %s1118_s1 }
   0x2   :  { %12 = vsyncpa [#allocation3], 0 }
   0x3   :  { %14 = vsyncpa [#allocation3 + $0x1], 0 }
   0x4   :  { %15 = vsyncpa [#allocation6], 0 }
   0x5   :  { %16 = vsyncpa [#allocation9], 0 }
   0x6   :  { %17 = vsyncpa [#allocation4], 0 }
   0x7   :  { %19 = vsyncpa [#allocation4 + $0x1], 0  ;;  %s947_s24 = smov 0   ;;  %s949_s25 = smov 0  }
   0x8   :  { %s951_s26 = smov 0   ;;  %s953_s27 = smov 0  }
   0x9 LB: > { %s1126_s1 = sld [smem:[#allocation15_spill]]  ;;  %s971_s8 = sadd.s32 4294967295, %s900_s27   ;;  %s900_s27 = sphi %s953_s27, %s1136_s27   ;;  %s896_s26 = sphi %s951_s26, %s1135_s26   ;;  %s892_s25 = sphi %s949_s25, %s1134_s25   ;;  %s888_s24 = sphi %s947_s24, %s1133_s24  }
   0xa   : > { %p605_p0 = scmp.ge.s32.totalorder %s900_s27, 1  ;;  %p46_p1 = scmp.eq.s32.totalorder %s971_s8, 0 }
   0xb   : > { %p208_p2 = scmp.lt.s32.totalorder %s900_s27, 4  ;;  %s902_s10 = smov [#allocation5]  }
   0xc   : > { %s221_s11 = sshll.u32 %s902_s10, 4  ;;  %s236_s14 = sshll.u32 %s1120_s3, 4  ;;  %s222_s11 = int_to_ptr.vmem [resolvable:$true] %s221_s11  ;;  %s237_s14 = int_to_ptr.hbm [resolvable:$true] %s236_s14 }
   0xd   : > { %p976_p3 = pnand %p605_p0, %p208_p2  ;;  %s253_s18 = sshll.u32 %s1122_s5, 4  ;;  %s254_s18 = int_to_ptr.hbm [resolvable:$true] %s253_s18 }
   0xe   : > { %s903_s19 = smov [#allocation7]   ;;  %s904_s21 = smov 128  }
   0xf   : > { %s219_s30 = sshll.u32 %s1126_s1, 4  ;;  %p638_p4 = pneg %p976_p3  ;;  %s220_s30 = int_to_ptr.hbm [resolvable:$true] %s219_s30 }
  0x10   : > { %s238_s20 = sshll.u32 %s903_s19, 4  ;;  %s905_s22 = smov 8   ;;  %s239_s20 = int_to_ptr.vmem [resolvable:$true] %s238_s20 }
  0x11   : > { %p987_p5 = pnand %p638_p4, %p46_p1  ;;  %s906_s23 = smov [#allocation8]  }
  0x12   : > { %s255_s28 = sshll.u32 %s906_s23, 4  ;;  %s604_s29 = sadd.s32 4294967294, %s900_s27   ;;  %s256_s28 = int_to_ptr.vmem [resolvable:$true] %s255_s28 }
  0x13   : > { %641 = dma.hbm_to_vmem [thread:$0]  (!%p987_p5), %s220_s30, 2048, %s222_s11, [#allocation6], %s904_s21, %s904_s21, %s905_s22  }
  0x14   : > { %644 = dma.hbm_to_vmem [thread:$0]  (!%p987_p5), %s237_s14, 2048, %s239_s20, [#allocation6], %s904_s21, %s904_s21, %s905_s22  }
  0x15   : > { %647 = dma.hbm_to_vmem [thread:$0]  (!%p987_p5), %s254_s18, 2048, %s256_s28, [#allocation9], %s904_s21, %s904_s21, %s905_s22  }
  0x16   : > { %s1002_s10 = sadd.s32 1, %s900_s27   ;;  %s32_s12 = sadd.s32 1, %s896_s26 }
  0x17   : > { %s29_s30 = ssub.s32 %s900_s27, %s1002_s10  ;;  %p39_p6 = scmp.ne.s32.totalorder %s896_s26, %s892_s25 }
  0x18   : > { %p30_p7 = scmp.eq.s32.totalorder %s29_s30, 0  ;;  %p40_p8 = scmp.eq.s32.totalorder %s900_s27, 0 }
  0x19   : > { %p45_p9 = scmp.ne.s32.totalorder %s892_s25, %s888_s24  ;;  %p195_p10 = scmp.eq.s32.totalorder %s971_s8, 2 }
  0x1a   : > { %s1014_s11 = scalar_select %p30_p7, %s896_s26, %s32_s12  }
  0x1b   : > { %p1018_p11 = por %p46_p1, %p45_p9  ;;  %p1022_p12 = por %p195_p10, %p39_p6 }
  0x1c   : > { %p201_p13 = scmp.eq.s32.totalorder %s604_s29, 2  ;;  %p41_p0 = por %p40_p8, %p39_p6 }
  0x1d   : > { %s272_s15 = sand.u32 1, %s896_s26   ;;  %p659_p4 = scmp.lt.s32.totalorder %s900_s27, 3 }
  0x1e   : > { %p1027_p2 = por %p201_p13, %p45_p9  ;;  %s610_s17 = sshll.u32 %s272_s15, 3 }
  0x1f   : > { %s611_s18 = sshll.u32 %s900_s27, 3  ;;  %s276_s23 = scalar_lea.vmem [#allocation2], %s610_s17 }
  0x20   : > { %s280_s21 = scalar_lea.hbm %s1117_s0, %s611_s18  ;;  %s284_s28 = sshll.u32 %s276_s23, 4  ;;  %s285_s28 = int_to_ptr.vmem [resolvable:$true] %s284_s28 }
  0x21   : > { %s282_s22 = sshll.u32 %s280_s21, 4  ;;  %p1036_p5 = pnand %p659_p4, %p41_p0  ;;  %s283_s22 = int_to_ptr.hbm [resolvable:$true] %s282_s22 }
  0x22   : > { %s273_s12 = scalar_lea.sflag [#allocation3], %s272_s15  ;;  %s796_s30 = sshra.s32 %s283_s22, 4  ;;  %s797_s30 = int_to_ptr.hbm [resolvable:$true] %s796_s30 }
  0x23   : > { %s798_s1 = scalar_lea.hbm %s797_s30, 8  ;;  %p800_p7 = pneg %p1036_p5 }
  0x24   : > { %p799_p6 = scmp.ne.s32.totalorder %s797_s30, %s798_s1  ;;  %s803_s17 = scalar_lea.hbm %s1117_s0, 24 }
  0x25   : > { %p804_p10 = scmp.lt.s32.totalorder %s797_s30, %s1117_s0  ;;  %p805_p13 = scmp.lt.s32.totalorder %s803_s17, %s798_s1 }
  0x26   : > { %p801_p8 = pnand %p800_p7, %p799_p6 }
  0x27   : > { %p806_p0 = por %p805_p13, %p804_p10 }
  0x28   : > { %p802_p9 = pneg %p801_p8 }
  0x2a   : > { %p807_p4 = pnand %p806_p0, %p802_p9 }
  0x2c   : > { %810 = shalt.err (!%p807_p4)
}
  0x2d   : > { %651 = dma.hbm_to_vmem [thread:$0]  (!%p1036_p5), %s283_s22, 128, %s285_s28, %s273_s12  }
  0x2e   : > { %293 = sbr.rel (%p976_p3) target bundleno = 510 (0x1fe), region = 48  ;;  %s1053_s15 = sand.u32 (!%p976_p3), 1, %s892_s25  }
  0x2f   : > { %s613_s23 = sshll.u32 (!%p976_p3), %s1053_s15, 3  ;;  %s296_s18 = scalar_lea.sflag (!%p976_p3), [#allocation3], %s1053_s15 }
  0x30   : > { %s1059_s1 = scalar_lea.vmem (!%p976_p3), [#allocation2], %s613_s23 }
  0x33   : > { %871 = dma.done.wait (%p1018_p11), %s296_s18, 128  }
  0x34   : > { %873 = vsyncadd (%p1018_p11), %s296_s18, 4294967168 }
  0x35   : > { %875 = dma.done.wait (%p46_p1), [#allocation6], 4096  }
  0x36   : > { %877 = vsyncadd (%p46_p1), [#allocation6], 4294963200 }
  0x37   : > { %879 = dma.done.wait (%p46_p1), [#allocation9], 2048  }
  0x38   : > { %881 = vsyncadd (%p46_p1), [#allocation9], 4294965248  ;;  %v362_v0 = vld [vmem:[#allocation5 + $0x78] sm:$0xff]  ;;  %v361_v1 = vld [vmem:[#allocation5 + $0x70] sm:$0xff]  ;;  %s619_s30 = sshll.u32 %s971_s8, 3  ;;  %s345_s21 = scalar_lea.vmem [#allocation10], %s613_s23 }
  0x39   : > { %367 = vmatpush.msra.mxu0 %v362_v0  ;;  %v360_v2 = vld [vmem:[#allocation5 + $0x68] sm:$0xff]  ;;  %v359_v3 = vld [vmem:[#allocation5 + $0x60] sm:$0xff]  ;;  %v403_v4 = vld [vmem:[#allocation7 + $0x78] sm:$0xff]  ;;  %s500_s20 = scalar_lea.hbm %s1124_s7, %s619_s30  ;;  %s502_s18 = sshll.u32 %s345_s21, 4  ;;  %s503_s18 = int_to_ptr.vmem [resolvable:$true] %s502_s18 }
  0x3a   : > { %v358_v5 = vld [vmem:[#allocation5 + $0x58] sm:$0xff]  ;;  %408 = vmatpush.msra.mxu1 %v403_v4  ;;  %v402_v6 = vld [vmem:[#allocation7 + $0x70] sm:$0xff]  ;;  %v401_v7 = vld [vmem:[#allocation7 + $0x68] sm:$0xff]  ;;  %s490_s8 = scalar_lea.sflag [#allocation4], %s1053_s15  ;;  %s846_s23 = scalar_lea.hbm %s1124_s7, 24 }
  0x3b   : > { %368 = vmatpush.msra.mxu0 %v361_v1  ;;  %v357_v8 = vld [vmem:[#allocation5 + $0x50] sm:$0xff]  ;;  %v400_v9 = vld [vmem:[#allocation7 + $0x60] sm:$0xff]  ;;  %v356_v10 = vld [vmem:[#allocation5 + $0x48] sm:$0xff] }
  0x3c   : > { %409 = vmatpush.msra.mxu1 %v402_v6  ;;  %v399_v11 = vld [vmem:[#allocation7 + $0x58] sm:$0xff]  ;;  %v355_v12 = vld [vmem:[#allocation5 + $0x40] sm:$0xff]  ;;  %v398_v13 = vld [vmem:[#allocation7 + $0x50] sm:$0xff] }
  0x3d   : > { %369 = vmatpush.msra.mxu0 %v360_v2  ;;  %v354_v14 = vld [vmem:[#allocation5 + $0x38] sm:$0xff]  ;;  %v397_v15 = vld [vmem:[#allocation7 + $0x48] sm:$0xff]  ;;  %v353_v16 = vld [vmem:[#allocation5 + $0x30] sm:$0xff] }
  0x3e   : > { %410 = vmatpush.msra.mxu1 %v401_v7  ;;  %v396_v17 = vld [vmem:[#allocation7 + $0x40] sm:$0xff]  ;;  %v352_v18 = vld [vmem:[#allocation5 + $0x28] sm:$0xff]  ;;  %v395_v19 = vld [vmem:[#allocation7 + $0x38] sm:$0xff] }
  0x3f   : > { %370 = vmatpush.msra.mxu0 %v359_v3  ;;  %v351_v20 = vld [vmem:[#allocation5 + $0x20] sm:$0xff]  ;;  %v394_v21 = vld [vmem:[#allocation7 + $0x30] sm:$0xff]  ;;  %v350_v22 = vld [vmem:[#allocation5 + $0x18] sm:$0xff] }
  0x40   : > { %411 = vmatpush.msra.mxu1 %v400_v9  ;;  %v393_v23 = vld [vmem:[#allocation7 + $0x28] sm:$0xff]  ;;  %v349_v24 = vld [vmem:[#allocation5 + $0x10] sm:$0xff]  ;;  %v392_v25 = vld [vmem:[#allocation7 + $0x20] sm:$0xff] }
  0x41   : > { %371 = vmatpush.msra.mxu0 %v358_v5  ;;  %v348_v26 = vld [vmem:[#allocation5 + $0x8] sm:$0xff]  ;;  %v391_v27 = vld [vmem:[#allocation7 + $0x18] sm:$0xff]  ;;  %v347_v28 = vld [vmem:[#allocation5] sm:$0xff] }
  0x42   : > { %412 = vmatpush.msra.mxu1 %v399_v11  ;;  %v346_v29 = vld [vmem:[%s1059_s1] sm:$0xff]  ;;  %v389_v31 = vld [vmem:[#allocation7 + $0x8] sm:$0xff]  ;;  %v388_v32 = vld [vmem:[#allocation7] sm:$0xff]  ;;  %s504_s1 = sshll.u32 %s500_s20, 4  ;;  %s505_s1 = int_to_ptr.hbm [resolvable:$true] %s504_s1 }
  0x43   : > { %372 = vmatpush.msra.mxu0 %v357_v8  ;;  %v390_v30 = vld [vmem:[#allocation7 + $0x10] sm:$0xff]  ;;  %v443_v33 = vld [vmem:[#allocation8 + $0x78] sm:$0xff]  ;;  %v441_v35 = vld [vmem:[#allocation8 + $0x68] sm:$0xff]  ;;  %s840_s9 = sshra.s32 %s505_s1, 4  ;;  %s841_s9 = int_to_ptr.hbm [resolvable:$true] %s840_s9 }
  0x44   : > { %413 = vmatpush.msra.mxu1 %v398_v13  ;;  %v442_v34 = vld [vmem:[#allocation8 + $0x70] sm:$0xff]  ;;  %444 = vmatpush.msra.mxu2 %v443_v33  ;;  %v440_v36 = vld [vmem:[#allocation8 + $0x60] sm:$0xff]  ;;  %v439_v37 = vld [vmem:[#allocation8 + $0x58] sm:$0xff]  ;;  %s842_s13 = scalar_lea.hbm %s841_s9, 8  ;;  %p847_p5 = scmp.lt.s32.totalorder %s841_s9, %s1124_s7 }
  0x45   : > { %373 = vmatpush.msra.mxu0 %v356_v10  ;;  %v438_v38 = vld [vmem:[#allocation8 + $0x50] sm:$0xff]  ;;  %v437_v39 = vld [vmem:[#allocation8 + $0x48] sm:$0xff]  ;;  %v436_v40 = vld [vmem:[#allocation8 + $0x40] sm:$0xff]  ;;  %p843_p1 = scmp.ne.s32.totalorder %s841_s9, %s842_s13  ;;  %p848_p6 = scmp.lt.s32.totalorder %s846_s23, %s842_s13 }
  0x46   : > { %414 = vmatpush.msra.mxu1 %v397_v15  ;;  %445 = vmatpush.msra.mxu2 %v442_v34  ;;  %v435_v41 = vld [vmem:[#allocation8 + $0x38] sm:$0xff]  ;;  %v434_v42 = vld [vmem:[#allocation8 + $0x30] sm:$0xff]  ;;  %v433_v43 = vld [vmem:[#allocation8 + $0x28] sm:$0xff] }
  0x47   : > { %374 = vmatpush.msra.mxu0 %v355_v12  ;;  %v432_v44 = vld [vmem:[#allocation8 + $0x20] sm:$0xff]  ;;  %v431_v45 = vld [vmem:[#allocation8 + $0x18] sm:$0xff]  ;;  %v701_v46 = vld [vmem:[%s1119_s2] ss:$0 sm:$0xff]  ;;  %p844_p3 = pnand %p843_p1, %p1022_p12  ;;  %p849_p7 = por %p848_p6, %p847_p5 }
  0x48   : > { %415 = vmatpush.msra.mxu1 %v396_v17  ;;  %446 = vmatpush.msra.mxu2 %v441_v35  ;;  %v430_v47 = vld [vmem:[#allocation8 + $0x10] sm:$0xff]  ;;  %v429_v51 = vld [vmem:[#allocation8 + $0x8] sm:$0xff]  ;;  %v428_v52 = vld [vmem:[#allocation8] sm:$0xff] }
  0x49   : > { %375 = vmatpush.msra.mxu0 %v354_v14  ;;  %v702_v53 = vld [vmem:[%s1121_s4] ss:$0 sm:$0xff]  ;;  %p845_p11 = pneg %p844_p3 }
  0x4a   : > { %416 = vmatpush.msra.mxu1 %v395_v19  ;;  %447 = vmatpush.msra.mxu2 %v440_v36  ;;  %v703_v57 = vld [vmem:[%s1123_s6] ss:$0 sm:$0xff] }
  0x4b   : > { %376 = vmatpush.msra.mxu0 %v353_v16  ;;  %p850_p8 = pnand %p849_p7, %p845_p11 }
  0x4c   : > { %417 = vmatpush.msra.mxu1 %v394_v21  ;;  %448 = vmatpush.msra.mxu2 %v439_v37 }
  0x4d   : > { %377 = vmatpush.msra.mxu0 %v352_v18 }
  0x4e   : > { %418 = vmatpush.msra.mxu1 %v393_v23  ;;  %449 = vmatpush.msra.mxu2 %v438_v38 }
  0x4f   : > { %378 = vmatpush.msra.mxu0 %v351_v20 }
  0x50   : > { %419 = vmatpush.msra.mxu1 %v392_v25  ;;  %450 = vmatpush.msra.mxu2 %v437_v39 }
  0x51   : > { %379 = vmatpush.msra.mxu0 %v350_v22 }
  0x52   : > { %420 = vmatpush.msra.mxu1 %v391_v27  ;;  %451 = vmatpush.msra.mxu2 %v436_v40 }
  0x53   : > { %380 = vmatpush.msra.mxu0 %v349_v24 }
  0x54   : > { %421 = vmatpush.msra.mxu1 %v390_v30  ;;  %452 = vmatpush.msra.mxu2 %v435_v41 }
  0x55   : > { %381 = vmatpush.msra.mxu0 %v348_v26 }
  0x56   : > { %422 = vmatpush.msra.mxu1 %v389_v31  ;;  %453 = vmatpush.msra.mxu2 %v434_v42 }
  0x57   : > { %382 = vmatpush.msra.mxu0 %v347_v28 }
  0x58   : > { %383 = vmatmul.f32.vlgmr.msra.gmra.mxu0 %v346_v29  ;;  %423 = vmatpush.msra.mxu1 %v388_v32 }
  0x59   : > { %454 = vmatpush.msra.mxu2 %v433_v43 }
  0x5b   : > { %455 = vmatpush.msra.mxu2 %v432_v44 }
  0x5d   : > { %456 = vmatpush.msra.mxu2 %v431_v45 }
  0x5f   : > { %457 = vmatpush.msra.mxu2 %v430_v47 }
  0x61   : > { %458 = vmatpush.msra.mxu2 %v429_v51 }
  0x63   : > { %459 = vmatpush.msra.mxu2 %v428_v52 }
  0xd5   : > { %v384_v48 = vpop.f32.mrf.mxu0 }
  0xd6   : > { %v385_v49 = vadd.f32 %v701_v46, %v384_v48 }
  0xd8   : > { %v387_v50 = vmax.f32 %v385_v49, 0.0 }
  0xda   : > { %424 = vmatmul.f32.vlgmr.msra.gmra.mxu1 %v387_v50 }
 0x157   : > { %v425_v54 = vpop.f32.mrf.mxu1 }
 0x158   : > { %v426_v55 = vadd.f32 %v702_v53, %v425_v54 }
 0x15a   : > { %460 = vmatmul.f32.vlgmr.msra.gmra.mxu2 %v426_v55  ;;  %v464_v56 = vmul.f32 %v426_v55, %v426_v55 }
 0x15c   : > { %465 = vadd.xlane.f32.xlu0 %v464_v56 }
 0x1cf   : > { %v466_v58 = vpop.xlane.xlu0 %465 }
 0x1d0   : > { %v471_v60 = vadd.f32 %v703_v57, %v466_v58 }
 0x1dd   : > { %v461_v59 = vpop.f32.mrf.mxu2 }
 0x1de   : > { %v472_v61 = vmul.f32 2.0, %v461_v59 }
 0x1e0   : > { %v473_v62 = vsub.f32 %v471_v60, %v472_v61 }
 0x1e2   : > { %v474_v63 = vmax.f32 %v473_v62, 0.0 }
 0x1e4   : > { %704 = vrsqrt.f32 %v474_v63  ;;  %vm482_vm0 = vcmp.eq.f32.partialorder %v474_v63, inf  ;;  %v485_v7 = vand.u32 2147483648, %v474_v63  ;;  %vm484_vm1 = vcmp.eq.f32.partialorder %v474_v63, 0.0 }
 0x1ea   : > { %v705_v0 = vpop.eup %704 }
 0x1eb   : > { %v476_v1 = vmul.f32 %v705_v0, %v474_v63 }
 0x1ed   : > { %v477_v2 = vmul.f32 %v705_v0, %v476_v1 }
 0x1ef   : > { %v478_v3 = vmul.f32 0.5, %v477_v2 }
 0x1f1   : > { %v479_v4 = vsub.f32 1.5, %v478_v3 }
 0x1f3   : > { %v480_v5 = vmul.f32 %v705_v0, %v479_v4 }
 0x1f5   : > { %v481_v6 = vmul.f32 %v480_v5, %v474_v63 }
 0x1f7   : > { %v483_v8 = vsel %vm482_vm0, %v474_v63, %v481_v6 }
 0x1f8   : > { %v486_v9 = vsel %vm484_vm1, %v485_v7, %v483_v8 }
 0x1f9   : > { %v487_v10 = vsub.f32 0.0, %v486_v9 }
 0x1fb   : > { %488 = vst [vmem:[%s345_s21] sm:$0xff] %v487_v10 }
 0x1fc   : > { %853 = shalt.err (!%p850_p8)
}
 0x1fd   : > { %636 = dma.vmem_to_hbm [thread:$0]  (%p1022_p12), %s503_s18, 128, %s505_s1, %s490_s8  }
 0x1fe PF: > { %p663_p9 = scmp.ge.s32.totalorder %s900_s27, 2  ;;  %s516_s15 = sand.u32 1, %s888_s24  }
 0x1ff   : > { %s517_s30 = scalar_lea.sflag [#allocation4], %s516_s15 }
 0x200   : > { %p653_p10 = pnand %p663_p9, %p1027_p2 }
 0x202   : > { %p654_p13 = pneg %p653_p10 }
 0x204   : > { %883 = dma.done.wait (%p654_p13), %s517_s30, 128  }
 0x205   : > { %885 = vsyncadd (%p654_p13), %s517_s30, 4294967168  ;;  %p22_p0 = scmp.ge.s32.totalorder %s1002_s10, 5   ;;  %s1133_s24 = smov %s892_s25 }
 0x206   : > { %s1134_s25 = smov %s896_s26  ;;  %s1135_s26 = smov %s1014_s11 }
 0x207   : > { %s1136_s27 = smov %s1002_s10  ;;  %24 = sbr.rel (!%p22_p0) target bundleno = 9 (0x9), region = 105 }
 0x20c   :  { %523 = vsyncpa [#allocation3], 1 }
 0x20d   :  { %525 = vsyncpa [#allocation3 + $0x1], 1 }
 0x20e   :  { %526 = vsyncpa [#allocation6], 1 }
 0x20f   :  { %527 = vsyncpa [#allocation9], 1 }
 0x210   :  { %528 = vsyncpa [#allocation4], 1 }
 0x211   :  { %530 = vsyncpa [#allocation4 + $0x1], 1 }

</bundles_post_ra>
